<compile_context>
chip_gen: v5e
topology: v5e:2x2
jax: 0.10.0
libtpu: 0.0.40
codegen_flags: <defaults>
</compile_context>

<pallas_src>
import jax
import jax.numpy as jnp
from jax.experimental import pallas as pl
from jax.experimental.pallas import tpu as pltpu


def _round_up(x: int, m: int) -> int:
    return ((x + m - 1) // m) * m


def _apply_activation(h, activation, negative_slope):
    if activation == "relu":
        return jnp.maximum(h, 0.0)
    if activation == "tanh":
        return jnp.tanh(h)
    if activation == "leaky_relu":
        return jnp.where(h > 0, h, negative_slope * h)
    raise ValueError(f"unknown activation: {activation!r}")


def _apply_mlp(h, w_refs, bias_ref, out_dims, activation, negative_slope,
               mxu_dtype):
    """MLP decoder.  h: [rows, D] f32.  w_refs[i]: [in_i, out_i] (pre-transposed,
    mxu_dtype).  bias_ref: packed [L, max_out] f32 bias table."""
    bias_all = bias_ref[...]                      # tiny; one lane-dense load
    num_layers = len(w_refs)
    for i in range(num_layers):
        w = w_refs[i][...]
        b = bias_all[i:i + 1, :out_dims[i]]       # [1, out_i] (static slice)
        h = jnp.dot(h.astype(mxu_dtype), w,
                    preferred_element_type=jnp.float32) + b
        if i < num_layers - 1:
            h = _apply_activation(h, activation, negative_slope)   # f32 VPU
    return h


def make_histogram_kernel(num_layers, seq_len, out_dims, activation,
                          negative_slope, mxu_dtype, count_dtype):
    """grid = (batch tiles [parallel], vocab tiles [arbitrary reduction])."""

    def kernel(x_ref, emb_ref, *rest):
        w_refs = rest[:num_layers]
        bias_ref = rest[num_layers]
        out_ref = rest[num_layers + 1]
        acc_ref = rest[num_layers + 2]            # [b_tile, D] f32 VMEM scratch

        k = pl.program_id(1)

        @pl.when(k == 0)
        def _():
            acc_ref[...] = jnp.zeros_like(acc_ref)

        x = x_ref[...]                            # [b_tile, S] int32
        b_tile = x.shape[0]
        p_tile = emb_ref.shape[0]

        # Per-row token histogram restricted to this vocab tile.  Tokens outside
        # the tile simply don't match, so accumulating the partial
        # counts @ table products over the k axis reproduces the full gather-sum.
        base = k * p_tile
        iota = jax.lax.broadcasted_iota(jnp.int32, (b_tile, p_tile), 1) + base
        counts = jnp.zeros((b_tile, p_tile), count_dtype)
        if seq_len <= 32:                         # short S: full unroll is fine
            for s in range(seq_len):
                counts = counts + (x[:, s:s + 1] == iota).astype(count_dtype)
        else:                                     # long S: bound live ranges
            def body(s, c):
                tok = x_ref[:, pl.ds(s, 1)]
                return c + (tok == iota).astype(count_dtype)
            counts = jax.lax.fori_loop(0, seq_len, body, counts, unroll=8)

        # Embedding gather + sum over sequence == counts @ table (MXU), f32 acc.
        acc_ref[...] += jnp.dot(counts.astype(mxu_dtype), emb_ref[...],
                                preferred_element_type=jnp.float32)

        @pl.when(k == pl.num_programs(1) - 1)
        def _():
            h = _apply_mlp(acc_ref[...], w_refs, bias_ref, out_dims,
                           activation, negative_slope, mxu_dtype)
            out_ref[...] = h.astype(out_ref.dtype)

    return kernel


def make_gather_kernel(num_layers, seq_len, b_tile, out_dims, activation,
                       negative_slope, mxu_dtype):
    """grid = (batch tiles [parallel],).  Token ids arrive via scalar prefetch
    (SMEM); embedding rows are DMA-gathered straight from HBM."""

    def kernel(x_sref, emb_hbm, *rest):
        w_refs = rest[:num_layers]
        bias_ref = rest[num_layers]
        out_ref = rest[num_layers + 1]
        rows = rest[num_layers + 2]               # VMEM [(S*b_tile), D]
        sem = rest[num_layers + 3]                # DMA sems [S]

        i = pl.program_id(0)

        # Issue all row-gather DMAs (data-dependent source index), then wait.
        for s in range(seq_len):
            for bb in range(b_tile):
                tok = x_sref[i * b_tile + bb, s]
                pltpu.make_async_copy(emb_hbm.at[pl.ds(tok, 1)],
                                      rows.at[pl.ds(s * b_tile + bb, 1)],
                                      sem.at[s]).start()
        for s in range(seq_len):
            for bb in range(b_tile):
                pltpu.make_async_copy(emb_hbm.at[pl.ds(0, 1)],
                                      rows.at[pl.ds(s * b_tile + bb, 1)],
                                      sem.at[s]).wait()

        # Sum the gathered rows over the sequence axis (f32 accumulation).
        d = rows.shape[-1]
        h = jnp.zeros((b_tile, d), jnp.float32)
        for s in range(seq_len):
            h = h + rows[pl.ds(s * b_tile, b_tile), :].astype(jnp.float32)

        h = _apply_mlp(h, w_refs, bias_ref, out_dims, activation,
                       negative_slope, mxu_dtype)
        out_ref[...] = h.astype(out_ref.dtype)

    return kernel


def toy_model_forward(x, emb_w, weights, biases, *, activation="relu",
                      negative_slope=0.1, mxu_dtype=jnp.bfloat16,
                      count_dtype=jnp.float32, embed_impl="auto",
                      b_tile=None, p_tile=None, emb_buffers=2):
    """ToyModel forward.

    x: [B, S] int32 token ids.  emb_w: [p, D] f32.  weights[i]: [out_i, in_i]
    (torch nn.Linear layout), biases[i]: [out_i].  Returns [B, mlp_dims[-1]] f32.

    mxu_dtype: MXU operand dtype (bf16 is native on v5e/v6e/v7x; accumulation and
    activations stay f32).  count_dtype: histogram accumulation dtype (bf16 is
    exact for S<=256 and halves VALU work on v6e/v7x; f32 is always safe).
    embed_impl: "histogram" | "gather" | "auto".
    emb_buffers: pipeline depth for the embedding-table tile (3 can help v5e).
    """
    x = jnp.asarray(x, jnp.int32)
    B, S = x.shape
    p, D = emb_w.shape
    num_layers = len(weights)
    out_dim = weights[-1].shape[0]
    out_pad = _round_up(out_dim, 128)             # lane-dense, unmasked store

    if embed_impl == "auto":
        # Histogram does O(B*S*p) VPU work; switch to the DMA gather once the
        # vocab is big enough that the compares dominate the O(B*S*D) row moves.
        embed_impl = "gather" if p >= 1024 else "histogram"

    # ---- batch tiling -------------------------------------------------------
    if b_tile is None:
        if embed_impl == "gather":
            # TODO(synk): scalable gather (per-s batched DMAs / sorted tokens) so
            # the per-tile DMA unroll doesn't grow with b_tile.
            b_tile = min(_round_up(B, 8), 8)
        else:
            # >=256 rows fills the MXU M dim (2x256^2 on v6e/v7x, 4x128^2 v5e).
            b_tile = min(_round_up(B, 8), 256)
    b_tile = _round_up(b_tile, 8)
    b_pad = _round_up(B, b_tile)
    x_pad = jnp.zeros((b_pad, S), jnp.int32).at[:B].set(x)

    # ---- parameter layout plumbing (host side, free) --------------------------
    # Linear weights pre-transposed to [in, out] so the kernel does h @ w with the
    # output on the lane axis; the last layer is lane-padded to out_pad.
    w_list, out_dims = [], []
    for i, w in enumerate(weights):
        w_t = jnp.asarray(w, jnp.float32).T
        if i == num_layers - 1 and out_pad != out_dim:
            w_t = jnp.pad(w_t, ((0, 0), (0, out_pad - out_dim)))
        w_list.append(w_t.astype(mxu_dtype))
        out_dims.append(w_t.shape[1])

    # One packed lane-dense [L, max_out] f32 bias table (single DMA).
    max_out = max(out_dims)
    bias_pack = jnp.zeros((num_layers, max_out), jnp.float32)
    for i, b in enumerate(biases):
        b_row = jnp.asarray(b, jnp.float32).reshape(-1)
        bias_pack = bias_pack.at[i, :b_row.shape[0]].set(b_row)

    emb_in = jnp.asarray(emb_w).astype(mxu_dtype)

    count_dtype = jnp.dtype(count_dtype)
    if count_dtype != jnp.dtype(jnp.float32) and S > 256:
        count_dtype = jnp.dtype(jnp.float32)      # keep integer counts exact

    # ---- shared cost bookkeeping ----------------------------------------------
    in_dims = [D] + out_dims[:-1]
    mlp_flops = sum(2 * b_pad * in_dims[i] * out_dims[i]
                    for i in range(num_layers))
    trans = b_pad * sum(out_dims[:-1]) if activation == "tanh" else 0
    param_bytes = (sum(w.size * w.dtype.itemsize for w in w_list)
                   + bias_pack.size * bias_pack.dtype.itemsize)
    out_bytes = b_pad * out_pad * 4
    out_shape = jax.ShapeDtypeStruct((b_pad, out_pad), jnp.float32)

    if embed_impl == "histogram":
        emb_itemsize = jnp.dtype(mxu_dtype).itemsize
        if p_tile is None:
            # Table tile sized so one double-buffered tile stays ~<= 4 MiB; the
            # whole kernel then fits comfortably inside v7x's 64 MiB VMEM.
            budget_rows = max(8, (4 << 20) // max(1, 2 * D * emb_itemsize))
            p_tile = min(_round_up(p, 8), _round_up(min(budget_rows, 2048), 8))
        p_tile = _round_up(p_tile, 8)
        p_pad = _round_up(p, p_tile)
        emb_pad = jnp.zeros((p_pad, D), mxu_dtype).at[:p].set(emb_in)

        grid = (b_pad // b_tile, p_pad // p_tile)
        if emb_buffers == 2:
            emb_spec = pl.BlockSpec((p_tile, D), lambda i, k: (k, 0))
        else:                                     # e.g. Buffered(3) on v5e
            emb_spec = pl.BlockSpec((p_tile, D), lambda i, k: (k, 0),
                                    pipeline_mode=pl.Buffered(emb_buffers))
        in_specs = ([pl.BlockSpec((b_tile, S), lambda i, k: (i, 0)), emb_spec]
                    + [pl.BlockSpec(w.shape, lambda i, k: (0, 0))
                       for w in w_list]
                    + [pl.BlockSpec(bias_pack.shape, lambda i, k: (0, 0))])
        out_specs = pl.BlockSpec((b_tile, out_pad), lambda i, k: (i, 0))
        scratch = [pltpu.VMEM((b_tile, D), jnp.float32)]

        kernel = make_histogram_kernel(num_layers, S, out_dims, activation,
                                       negative_slope, mxu_dtype, count_dtype)

        tile_bytes = (b_tile * S * 4 + p_tile * D * emb_itemsize
                      + b_tile * out_pad * 4)
        vmem_need = 2 * tile_bytes + param_bytes + b_tile * D * 4 + (2 << 20)
        vmem_limit = int(min(max(vmem_need, 4 << 20), 64 << 20))

        flops = 2 * b_pad * p_pad * D + mlp_flops
        bytes_accessed = (x_pad.size * 4 + emb_pad.size * emb_itemsize
                          + param_bytes + out_bytes)

        out_padded = pl.pallas_call(
            kernel,
            out_shape=out_shape,
            grid_spec=pltpu.PrefetchScalarGridSpec(
                num_scalar_prefetch=0, grid=grid,
                in_specs=in_specs, out_specs=out_specs,
                scratch_shapes=scratch),
            compiler_params=pltpu.CompilerParams(
                dimension_semantics=("parallel", "arbitrary"),
                vmem_limit_bytes=vmem_limit),
            cost_estimate=pl.CostEstimate(flops=flops, transcendentals=trans,
                                          bytes_accessed=bytes_accessed),
        )(x_pad, emb_pad, *w_list, bias_pack)

    elif embed_impl == "gather":
        emb_itemsize = jnp.dtype(emb_in.dtype).itemsize
        grid = (b_pad // b_tile,)
        in_specs = ([pl.BlockSpec(memory_space=pl.ANY)]    # table stays in HBM
                    + [pl.BlockSpec(w.shape, lambda i, xs: (0, 0))
                       for w in w_list]
                    + [pl.BlockSpec(bias_pack.shape, lambda i, xs: (0, 0))])
        out_specs = pl.BlockSpec((b_tile, out_pad), lambda i, xs: (i, 0))
        scratch = [pltpu.VMEM((S * b_tile, D), emb_in.dtype),
                   pltpu.SemaphoreType.DMA((S,))]

        kernel = make_gather_kernel(num_layers, S, b_tile, out_dims, activation,
                                    negative_slope, mxu_dtype)

        vmem_need = (param_bytes + S * b_tile * D * emb_itemsize
                     + 2 * b_tile * out_pad * 4 + (2 << 20))
        vmem_limit = int(min(max(vmem_need, 4 << 20), 64 << 20))

        flops = mlp_flops
        bytes_accessed = (x_pad.size * 4 + b_pad * S * D * emb_itemsize
                          + param_bytes + out_bytes)

        out_padded = pl.pallas_call(
            kernel,
            out_shape=out_shape,
            grid_spec=pltpu.PrefetchScalarGridSpec(
                num_scalar_prefetch=1, grid=grid,
                in_specs=in_specs, out_specs=out_specs,
                scratch_shapes=scratch),
            compiler_params=pltpu.CompilerParams(
                dimension_semantics=("parallel",),
                vmem_limit_bytes=vmem_limit),
            cost_estimate=pl.CostEstimate(flops=flops, transcendentals=trans,
                                          bytes_accessed=bytes_accessed),
        )(x_pad, emb_in, *w_list, bias_pack)

    else:
        raise ValueError(f"unknown embed_impl: {embed_impl!r}")

    return out_padded[:B, :out_dim]


if __name__ == "__main__":
    # Model hyper-params (small, consistent with the module's __init__).
    p = 16            # number of embeddings
    embed_dim = 32
    mlp_dims = (64, 16)
    embed_scale = 1.0
    activation = "relu"
    B, S = 2, 8       # batch of token-id sequences

    key = jax.random.PRNGKey(0)
    k_x, k_emb, *k_layers = jax.random.split(key, 2 + len(mlp_dims))

    x = jax.random.randint(k_x, (B, S), 0, p, dtype=jnp.int32)
    emb_w = jax.random.uniform(k_emb, (p, embed_dim), jnp.float32,
                               -embed_scale / 2, embed_scale / 2)

    dims = (embed_dim,) + tuple(mlp_dims)
    weights, biases = [], []
    for i, kl in enumerate(k_layers):
        kw, kb = jax.random.split(kl)
        bound = 1.0 / (dims[i] ** 0.5)
        weights.append(jax.random.uniform(kw, (dims[i + 1], dims[i]),
                                          jnp.float32, -bound, bound))
        biases.append(jax.random.uniform(kb, (dims[i + 1],),
                                         jnp.float32, -bound, bound))

    # Pure-JAX reference (f32), mirroring the torch forward exactly.
    ref = jnp.take(emb_w, x, axis=0).sum(axis=1)
    for i, (w, b) in enumerate(zip(weights, biases)):
        ref = ref @ w.T + b
        if i < len(weights) - 1:
            ref = jnp.maximum(ref, 0.0)

    # 1) Histogram path, f32 MXU operands, forced multi-tile vocab reduction
    #    (p_tile=8 -> two "arbitrary" grid steps) to exercise the accumulator.
    out_hist = toy_model_forward(x, emb_w, weights, biases,
                                 activation=activation,
                                 mxu_dtype=jnp.float32,
                                 embed_impl="histogram", p_tile=8)
    out_hist = jax.block_until_ready(out_hist)
    assert out_hist.shape == (B, mlp_dims[-1])
    assert jnp.allclose(out_hist, ref, atol=1e-5, rtol=1e-5)

    # 2) Scalar-prefetch DMA row-gather path, f32 MXU operands.
    out_gat = toy_model_forward(x, emb_w, weights, biases,
                                activation=activation,
                                mxu_dtype=jnp.float32, embed_impl="gather")
    out_gat = jax.block_until_ready(out_gat)
    assert jnp.allclose(out_gat, ref, atol=1e-5, rtol=1e-5)

    # 3) Default config: bf16 MXU operands (native on v5e/v6e/v7x), auto impl.
    out_bf16 = toy_model_forward(x, emb_w, weights, biases,
                                 activation=activation)
    out_bf16 = jax.block_until_ready(out_bf16)

    ref_bf = jnp.take(emb_w.astype(jnp.bfloat16).astype(jnp.float32),
                      x, axis=0).sum(axis=1)
    for i, (w, b) in enumerate(zip(weights, biases)):
        ref_bf = jnp.dot(ref_bf.astype(jnp.bfloat16),
                         w.T.astype(jnp.bfloat16),
                         preferred_element_type=jnp.float32) + b
        if i < len(weights) - 1:
            ref_bf = jnp.maximum(ref_bf, 0.0)
    assert jnp.allclose(out_bf16, ref_bf, atol=2e-2, rtol=2e-2)

    print("KERNEL_OK")
</pallas_src>

<mosaic_0001>
module attributes {stable_mosaic.version = 11 : i64} {
  func.func @kernel(%arg0: i32, %arg1: i32, %arg2: memref<8x8xi32, #tpu.memory_space<vmem>>, %arg3: memref<8x32xf32, #tpu.memory_space<vmem>>, %arg4: memref<32x64xf32, #tpu.memory_space<vmem>>, %arg5: memref<64x128xf32, #tpu.memory_space<vmem>>, %arg6: memref<2x128xf32, #tpu.memory_space<vmem>>, %arg7: memref<8x128xf32, #tpu.memory_space<vmem>>, %arg8: memref<8x32xf32, #tpu.memory_space<vmem>>) attributes {dimension_semantics = [#tpu.dimension_semantics<parallel>, #tpu.dimension_semantics<arbitrary>], iteration_bounds = array<i64: 1, 2>, scalar_prefetch = 0 : i64, scratch_operands = 1 : i64, tpu.core_type = #tpu.core_type<tc>, window_params = [{transform_indices = @transform_0, window_bounds = array<i64: 8, 8>}, {transform_indices = @transform_1, window_bounds = array<i64: 8, 32>}, {pipeline_mode = #tpu.pipeline_mode<synchronous>, transform_indices = @transform_2, window_bounds = array<i64: 32, 64>}, {pipeline_mode = #tpu.pipeline_mode<synchronous>, transform_indices = @transform_3, window_bounds = array<i64: 64, 128>}, {pipeline_mode = #tpu.pipeline_mode<synchronous>, transform_indices = @transform_4, window_bounds = array<i64: 2, 128>}, {transform_indices = @transform_5, window_bounds = array<i64: 8, 128>}]} {
    %c0_i32 = arith.constant 0 : i32
    %0 = arith.cmpi eq, %arg1, %c0_i32 : i32
    %1 = arith.extui %0 : i1 to i32
    %c0_i32_0 = arith.constant 0 : i32
    %2 = arith.cmpi ne, %1, %c0_i32_0 : i32
    scf.if %2 {
      %cst_10 = arith.constant 0.000000e+00 : f32
      %65 = vector.broadcast %cst_10 : f32 to vector<8x32xf32>
      %c0_11 = arith.constant 0 : index
      %c0_12 = arith.constant 0 : index
      %66 = vector.load %arg8[%c0_11, %c0_12] : memref<8x32xf32, #tpu.memory_space<vmem>>, vector<8x32xf32>
      tpu.vector_store %arg8[%c0_11, %c0_12], %65 {strides = array<i32>} : memref<8x32xf32, #tpu.memory_space<vmem>>, vector<8x32xf32>,
    } else {
    }
    %c0 = arith.constant 0 : index
    %c0_1 = arith.constant 0 : index
    %3 = vector.load %arg2[%c0, %c0_1] : memref<8x8xi32, #tpu.memory_space<vmem>>, vector<8x8xi32>
    %c8_i32 = arith.constant 8 : i32
    %4 = arith.muli %arg1, %c8_i32 : i32
    %5 = tpu.iota {dimensions = array<i32: 1>} : vector<8x8xi32>
    %6 = vector.broadcast %4 : i32 to vector<8x8xi32>
    %7 = arith.addi %5, %6 : vector<8x8xi32>
    %cst = arith.constant 0.000000e+00 : f32
    %8 = vector.broadcast %cst : f32 to vector<8x8xf32>
    %9 = vector.extract_strided_slice %3 {offsets = [0, 0], sizes = [8, 1], strides = [1, 1]} : vector<8x8xi32> to vector<8x1xi32>
    %10 = vector.broadcast %9 : vector<8x1xi32> to vector<8x8xi32>
    %11 = arith.cmpi eq, %10, %7 : vector<8x8xi32>
    %12 = arith.extui %11 : vector<8x8xi1> to vector<8x8xi32>
    %13 = arith.sitofp %12 : vector<8x8xi32> to vector<8x8xf32>
    %14 = arith.addf %8, %13 : vector<8x8xf32>
    %15 = vector.extract_strided_slice %3 {offsets = [0, 1], sizes = [8, 1], strides = [1, 1]} : vector<8x8xi32> to vector<8x1xi32>
    %16 = vector.broadcast %15 : vector<8x1xi32> to vector<8x8xi32>
    %17 = arith.cmpi eq, %16, %7 : vector<8x8xi32>
    %18 = arith.extui %17 : vector<8x8xi1> to vector<8x8xi32>
    %19 = arith.sitofp %18 : vector<8x8xi32> to vector<8x8xf32>
    %20 = arith.addf %14, %19 : vector<8x8xf32>
    %21 = vector.extract_strided_slice %3 {offsets = [0, 2], sizes = [8, 1], strides = [1, 1]} : vector<8x8xi32> to vector<8x1xi32>
    %22 = vector.broadcast %21 : vector<8x1xi32> to vector<8x8xi32>
    %23 = arith.cmpi eq, %22, %7 : vector<8x8xi32>
    %24 = arith.extui %23 : vector<8x8xi1> to vector<8x8xi32>
    %25 = arith.sitofp %24 : vector<8x8xi32> to vector<8x8xf32>
    %26 = arith.addf %20, %25 : vector<8x8xf32>
    %27 = vector.extract_strided_slice %3 {offsets = [0, 3], sizes = [8, 1], strides = [1, 1]} : vector<8x8xi32> to vector<8x1xi32>
    %28 = vector.broadcast %27 : vector<8x1xi32> to vector<8x8xi32>
    %29 = arith.cmpi eq, %28, %7 : vector<8x8xi32>
    %30 = arith.extui %29 : vector<8x8xi1> to vector<8x8xi32>
    %31 = arith.sitofp %30 : vector<8x8xi32> to vector<8x8xf32>
    %32 = arith.addf %26, %31 : vector<8x8xf32>
    %33 = vector.extract_strided_slice %3 {offsets = [0, 4], sizes = [8, 1], strides = [1, 1]} : vector<8x8xi32> to vector<8x1xi32>
    %34 = vector.broadcast %33 : vector<8x1xi32> to vector<8x8xi32>
    %35 = arith.cmpi eq, %34, %7 : vector<8x8xi32>
    %36 = arith.extui %35 : vector<8x8xi1> to vector<8x8xi32>
    %37 = arith.sitofp %36 : vector<8x8xi32> to vector<8x8xf32>
    %38 = arith.addf %32, %37 : vector<8x8xf32>
    %39 = vector.extract_strided_slice %3 {offsets = [0, 5], sizes = [8, 1], strides = [1, 1]} : vector<8x8xi32> to vector<8x1xi32>
    %40 = vector.broadcast %39 : vector<8x1xi32> to vector<8x8xi32>
    %41 = arith.cmpi eq, %40, %7 : vector<8x8xi32>
    %42 = arith.extui %41 : vector<8x8xi1> to vector<8x8xi32>
    %43 = arith.sitofp %42 : vector<8x8xi32> to vector<8x8xf32>
    %44 = arith.addf %38, %43 : vector<8x8xf32>
    %45 = vector.extract_strided_slice %3 {offsets = [0, 6], sizes = [8, 1], strides = [1, 1]} : vector<8x8xi32> to vector<8x1xi32>
    %46 = vector.broadcast %45 : vector<8x1xi32> to vector<8x8xi32>
    %47 = arith.cmpi eq, %46, %7 : vector<8x8xi32>
    %48 = arith.extui %47 : vector<8x8xi1> to vector<8x8xi32>
    %49 = arith.sitofp %48 : vector<8x8xi32> to vector<8x8xf32>
    %50 = arith.addf %44, %49 : vector<8x8xf32>
    %51 = vector.extract_strided_slice %3 {offsets = [0, 7], sizes = [8, 1], strides = [1, 1]} : vector<8x8xi32> to vector<8x1xi32>
    %52 = vector.broadcast %51 : vector<8x1xi32> to vector<8x8xi32>
    %53 = arith.cmpi eq, %52, %7 : vector<8x8xi32>
    %54 = arith.extui %53 : vector<8x8xi1> to vector<8x8xi32>
    %55 = arith.sitofp %54 : vector<8x8xi32> to vector<8x8xf32>
    %56 = arith.addf %50, %55 : vector<8x8xf32>
    %c0_2 = arith.constant 0 : index
    %c0_3 = arith.constant 0 : index
    %57 = vector.load %arg8[%c0_2, %c0_3] : memref<8x32xf32, #tpu.memory_space<vmem>>, vector<8x32xf32>
    %c0_4 = arith.constant 0 : index
    %c0_5 = arith.constant 0 : index
    %58 = vector.load %arg3[%c0_4, %c0_5] : memref<8x32xf32, #tpu.memory_space<vmem>>, vector<8x32xf32>
    %cst_6 = arith.constant dense<0.000000e+00> : vector<8x32xf32>
    %59 = tpu.matmul %56, %58, %cst_6 {dimension_numbers = #tpu.dot_dimension_numbers<[1], [0], [0], [1], [0, 0, 1, 1], [], []>} : vector<8x8xf32>, vector<8x32xf32>, vector<8x32xf32> -> vector<8x32xf32>
    %60 = arith.addf %57, %59 : vector<8x32xf32>
    %c0_7 = arith.constant 0 : index
    %c0_8 = arith.constant 0 : index
    %61 = vector.load %arg8[%c0_7, %c0_8] : memref<8x32xf32, #tpu.memory_space<vmem>>, vector<8x32xf32>
    tpu.vector_store %arg8[%c0_7, %c0_8], %60 {strides = array<i32>} : memref<8x32xf32, #tpu.memory_space<vmem>>, vector<8x32xf32>,
    %c1_i32 = arith.constant 1 : i32
    %62 = arith.cmpi eq, %arg1, %c1_i32 : i32
    %63 = arith.extui %62 : i1 to i32
    %c0_i32_9 = arith.constant 0 : i32
    %64 = arith.cmpi ne, %63, %c0_i32_9 : i32
    scf.if %64 {
      %c0_10 = arith.constant 0 : index
      %c0_11 = arith.constant 0 : index
      %65 = vector.load %arg8[%c0_10, %c0_11] : memref<8x32xf32, #tpu.memory_space<vmem>>, vector<8x32xf32>
      %c0_12 = arith.constant 0 : index
      %c0_13 = arith.constant 0 : index
      %66 = vector.load %arg6[%c0_12, %c0_13] : memref<2x128xf32, #tpu.memory_space<vmem>>, vector<2x128xf32>
      %c0_14 = arith.constant 0 : index
      %c0_15 = arith.constant 0 : index
      %67 = vector.load %arg4[%c0_14, %c0_15] : memref<32x64xf32, #tpu.memory_space<vmem>>, vector<32x64xf32>
      %68 = vector.extract_strided_slice %66 {offsets = [0, 0], sizes = [1, 64], strides = [1, 1]} : vector<2x128xf32> to vector<1x64xf32>
      %cst_16 = arith.constant dense<0.000000e+00> : vector<8x64xf32>
      %69 = tpu.matmul %65, %67, %cst_16 {dimension_numbers = #tpu.dot_dimension_numbers<[1], [0], [0], [1], [0, 0, 1, 1], [], []>} : vector<8x32xf32>, vector<32x64xf32>, vector<8x64xf32> -> vector<8x64xf32>
      %70 = vector.broadcast %68 : vector<1x64xf32> to vector<8x64xf32>
      %71 = arith.addf %69, %70 : vector<8x64xf32>
      %cst_17 = arith.constant 0.000000e+00 : f32
      %72 = vector.broadcast %cst_17 : f32 to vector<8x64xf32>
      %73 = arith.maximumf %71, %72 : vector<8x64xf32>
      %c0_18 = arith.constant 0 : index
      %c0_19 = arith.constant 0 : index
      %74 = vector.load %arg5[%c0_18, %c0_19] : memref<64x128xf32, #tpu.memory_space<vmem>>, vector<64x128xf32>
      %75 = vector.extract_strided_slice %66 {offsets = [1, 0], sizes = [1, 128], strides = [1, 1]} : vector<2x128xf32> to vector<1x128xf32>
      %cst_20 = arith.constant dense<0.000000e+00> : vector<8x128xf32>
      %76 = tpu.matmul %73, %74, %cst_20 {dimension_numbers = #tpu.dot_dimension_numbers<[1], [0], [0], [1], [0, 0, 1, 1], [], []>} : vector<8x64xf32>, vector<64x128xf32>, vector<8x128xf32> -> vector<8x128xf32>
      %77 = vector.broadcast %75 : vector<1x128xf32> to vector<8x128xf32>
      %78 = arith.addf %76, %77 : vector<8x128xf32>
      %c0_21 = arith.constant 0 : index
      %c0_22 = arith.constant 0 : index
      %79 = vector.load %arg7[%c0_21, %c0_22] : memref<8x128xf32, #tpu.memory_space<vmem>>, vector<8x128xf32>
      tpu.vector_store %arg7[%c0_21, %c0_22], %78 {strides = array<i32>} : memref<8x128xf32, #tpu.memory_space<vmem>>, vector<8x128xf32>,
    } else {
    }
    return
  }
  func.func @transform_0(%arg0: i32, %arg1: i32) -> (i32, i32) {
    %c0_i32 = arith.constant 0 : i32
    %c0_i32_0 = arith.constant 0 : i32
    return %arg0, %c0_i32 : i32, i32
  }
  func.func @transform_1(%arg0: i32, %arg1: i32) -> (i32, i32) {
    %c0_i32 = arith.constant 0 : i32
    %c0_i32_0 = arith.constant 0 : i32
    return %arg1, %c0_i32 : i32, i32
  }
  func.func @transform_2(%arg0: i32, %arg1: i32) -> (i32, i32) {
    %c0_i32 = arith.constant 0 : i32
    %c0_i32_0 = arith.constant 0 : i32
    %c0_i32_1 = arith.constant 0 : i32
    return %c0_i32, %c0_i32_0 : i32, i32
  }
  func.func @transform_3(%arg0: i32, %arg1: i32) -> (i32, i32) {
    %c0_i32 = arith.constant 0 : i32
    %c0_i32_0 = arith.constant 0 : i32
    %c0_i32_1 = arith.constant 0 : i32
    return %c0_i32, %c0_i32_0 : i32, i32
  }
  func.func @transform_4(%arg0: i32, %arg1: i32) -> (i32, i32) {
    %c0_i32 = arith.constant 0 : i32
    %c0_i32_0 = arith.constant 0 : i32
    %c0_i32_1 = arith.constant 0 : i32
    return %c0_i32, %c0_i32_0 : i32, i32
  }
  func.func @transform_5(%arg0: i32, %arg1: i32) -> (i32, i32) {
    %c0_i32 = arith.constant 0 : i32
    %c0_i32_0 = arith.constant 0 : i32
    return %arg0, %c0_i32 : i32, i32
  }
}

</mosaic_0001>

<bundles_post_ra>
// kernel: tpu_custom_call.1
= control target key start
LH: loop header
LB: loop body
LE: loop exit
PB: predicated region body
PF: predicated region fallthrough
CT: control target
= control target key end

     0   :  { %10 = vsyncpa [#allocation4], 0  ;;  %s1133_s0 = inlined_call_operand.hbm [shape: s32[8,8], index: 0, kind: input, shape index: {}]   ;;  %s1134_s1 = inlined_call_operand.hbm [shape: f32[16,32], index: 1, kind: input, shape index: {}]   ;;  %s1135_s2 = inlined_call_operand.hbm [shape: f32[32,64], index: 2, kind: input, shape index: {}]   ;;  %s1136_s3 = inlined_call_operand.hbm [shape: f32[64,128], index: 3, kind: input, shape index: {}]   ;;  %s1137_s4 = inlined_call_operand.vmem [shape: f32[2,128], index: 4, kind: input, shape index: {}]   ;;  %s1138_s5 = inlined_call_operand.hbm [shape: f32[8,128], index: 5, kind: output, shape index: {}]  }
   0x1   :  { %11 = vsyncpa [#allocation7], 0 }
   0x2   :  { %13 = vsyncpa [#allocation7 + $0x1], 0 }
   0x3   :  { %14 = vsyncpa [#allocation10], 0 }
   0x4   :  { %15 = vsyncpa [#allocation5], 0  ;;  %s980_s18 = smov 0   ;;  %s982_s19 = smov 0  }
   0x5   :  { %s984_s20 = smov 0   ;;  %s986_s21 = smov 0  }
   0x6   :  { %s988_s22 = smov 0   ;;  %s990_s23 = smov 0  }
   0x7 LB: > { %s204_s26 = sshll.u32 %s1135_s2, 4  ;;  %s1014_s27 = sadd.s32 4294967295, %s932_s23   ;;  %s932_s23 = sphi %s990_s23, %s21_s23   ;;  %s928_s22 = sphi %s988_s22, %s1147_s22   ;;  %s924_s21 = sphi %s986_s21, %s1146_s21   ;;  %s920_s20 = sphi %s984_s20, %s1145_s20   ;;  %s916_s19 = sphi %s982_s19, %s1144_s19   ;;  %s912_s18 = sphi %s980_s18, %s1143_s18   ;;  %s205_s26 = int_to_ptr.hbm [resolvable:$true] %s204_s26 }
   0x8   : > { %p574_p0 = scmp.ge.s32.totalorder %s932_s23, 1  ;;  %p80_p1 = scmp.eq.s32.totalorder %s1014_s27, 0 }
   0x9   : > { %p179_p2 = scmp.lt.s32.totalorder %s932_s23, 3  ;;  %s934_s29 = smov [#allocation8]  }
   0xa   : > { %s206_s30 = sshll.u32 %s934_s29, 4  ;;  %s193_s9 = sshll.u32 %s1133_s0, 4  ;;  %s207_s30 = int_to_ptr.vmem [resolvable:$true] %s206_s30  ;;  %s194_s9 = int_to_ptr.hbm [resolvable:$true] %s193_s9 }
   0xb   : > { %p1019_p3 = pnand %p574_p0, %p179_p2  ;;  %s935_s10 = smov 128  }
   0xc   : > { %s936_s11 = smov 8   ;;  %s937_s12 = smov [#allocation3]  }
   0xd   : > { %p622_p4 = pneg %p1019_p3  ;;  %s195_s13 = sshll.u32 %s937_s12, 4  ;;  %s196_s13 = int_to_ptr.vmem [resolvable:$true] %s195_s13 }
   0xe   : > { %s218_s16 = sshll.u32 %s1136_s3, 4  ;;  %s938_s17 = smov [#allocation9]   ;;  %s219_s16 = int_to_ptr.hbm [resolvable:$true] %s218_s16 }
   0xf   : > { %p1027_p5 = pnand %p622_p4, %p80_p1  ;;  %s220_s24 = sshll.u32 %s938_s17, 4  ;;  %s221_s24 = int_to_ptr.vmem [resolvable:$true] %s220_s24 }
  0x10   : > { %s30_s25 = sadd.s32 1, %s928_s22  ;;  %p73_p7 = scmp.ne.s32.totalorder %s920_s20, %s916_s19 }
  0x11   : > { %628 = dma.hbm_to_vmem [thread:$0]  (!%p1027_p5), %s205_s26, 512, %s207_s30, [#allocation7], %s935_s10, %s935_s10, %s936_s11  }
  0x12   : > { %625 = dma.hbm_to_vmem [thread:$0]  (!%p1027_p5), %s194_s9, 128, %s196_s13, [#allocation4]  }
  0x13   : > { %631 = dma.hbm_to_vmem [thread:$0]  (!%p1027_p5), %s219_s16, 1024, %s221_s24, [#allocation10], %s935_s10, %s935_s10, %s936_s11  }
  0x14   : > { %p31_p6 = scmp.ge.s32.totalorder %s30_s25, 2  ;;  %s66_s26 = sadd.s32 1, %s920_s20 }
  0x15   : > { %p74_p8 = scmp.eq.s32.totalorder %s932_s23, 0  ;;  %p79_p10 = scmp.ne.s32.totalorder %s916_s19, %s912_s18 }
  0x16   : > { %s1149_s25 = smov (%p31_p6, %s30_s25), 0  ;;  %p639_p11 = scmp.lt.s32.totalorder %s932_s23, 2 }
  0x17   : > { %p1050_p9 = por %p74_p8, %p73_p7  ;;  %s63_s30 = ssub.s32 %s928_s22, %s1149_s25 }
  0x18   : > { %p64_p12 = scmp.eq.s32.totalorder %s63_s30, 0  ;;  %p1061_p13 = por %p80_p1, %p79_p10 }
  0x19   : > { %s237_s7 = sand.u32 1, %s932_s23   ;;  %s239_s8 = sand.u32 1, %s920_s20  }
  0x1a   : > { %s1068_s9 = scalar_select %p64_p12, %s920_s20, %s66_s26  }
  0x1b   : > { %s579_s10 = sshll.u32 %s239_s8, 3  ;;  %s580_s11 = sshll.u32 %s928_s22, 3 }
  0x1c   : > { %s245_s18 = scalar_lea.hbm %s1134_s1, %s580_s11  ;;  %s241_s14 = scalar_lea.vmem [#allocation6], %s579_s10 }
  0x1d   : > { %s249_s15 = sshll.u32 %s241_s14, 4  ;;  %s247_s16 = sshll.u32 %s245_s18, 4  ;;  %s250_s15 = int_to_ptr.vmem [resolvable:$true] %s249_s15  ;;  %s248_s16 = int_to_ptr.hbm [resolvable:$true] %s247_s16 }
  0x1e   : > { %p633_p0 = pnand %p639_p11, %p1050_p9  ;;  %s238_s17 = scalar_lea.sflag [#allocation7], %s237_s7 }
  0x1f   : > { %258 = sbr.rel (%p1019_p3) target bundleno = 598 (0x256), region = 40 }
  0x20   : > { %635 = dma.hbm_to_vmem [thread:$0]  (!%p633_p0), %s248_s16, 128, %s250_s15, %s238_s17  }
  0x24   : > { %891 = dma.done.wait (%p80_p1), [#allocation4], 128  }
  0x25   : > { %893 = vsyncadd (%p80_p1), [#allocation4], 4294967168  ;;  %s265_s24 = sand.u32 1, %s1014_s27   ;;  %s267_s26 = sand.u32 1, %s916_s19  }
  0x26   : > { %s1086_s30 = sshll.u32 %s267_s26, 3  ;;  %s266_s29 = scalar_lea.sflag [#allocation7], %s265_s24 }
  0x27   : > { %s269_s7 = scalar_lea.vmem [#allocation6], %s1086_s30 }
  0x28   : > { %895 = dma.done.wait (%p1061_p13), %s266_s29, 128  }
  0x29   : > { %897 = vsyncadd (%p1061_p13), %s266_s29, 4294967168 }
  0x2a   : > { %899 = dma.done.wait (%p80_p1), [#allocation7], 512  }
  0x2b   : > { %901 = vsyncadd (%p80_p1), [#allocation7], 4294966784 }
  0x2c   : > { %903 = dma.done.wait (%p80_p1), [#allocation10], 1024  }
  0x2d   : > { %905 = vsyncadd (%p80_p1), [#allocation10], 4294966272  ;;  %p586_p2 = scmp.ne.s32.totalorder %s924_s21, 0 }
  0x2f   : > { %305 = sbr.rel (%p586_p2) target bundleno = 54 (0x36), region = 60 }
  0x34   : > { %vm306_vm0 = vcmask 261120   ;;  %v939_v0 = vmov 0.0  }
  0x35   : > { %307 = vst.msk [vmem:[#allocation2] sm:$0xff] %vm306_vm0, %v939_v0 }
  0x36 PF: > { %v308_v1 = vld [vmem:[#allocation3] sm:$0xff]  ;;  %v940_v2 = vmov 0   ;;  %v941_v3 = vmov 2   ;;  %v942_v4 = vmov 4   ;;  %v943_v5 = vmov 1   ;;  %v371_v10 = vld [vmem:[%s269_s7] sm:$0xff] }
  0x37   : > { %709 = vset.pattern.permute.xlu0 %v940_v2  ;;  %711 = vset.pattern.permute.xlu1 %v941_v3  ;;  %v944_v6 = vmov 3   ;;  %v945_v7 = vmov 5   ;;  %v946_v8 = vmov 6   ;;  %v947_v9 = vmov 7   ;;  %s587_s28 = sshll.u32 %s924_s21, 3  ;;  %p597_p1 = scmp.ne.s32.totalorder %s924_s21, 1 }
  0x38   : > { %315 = vperm.xlu0 %709, %v308_v1   ;;  %329 = vperm.xlu1 %711, %v308_v1   ;;  %v310_v12 = vlaneseq  ;;  %v312_v16 = vstv %s587_s28  ;;  %v948_v21 = vmov 0.0   ;;  %vm372_vm9 = vcmask 64512  }
  0x39   : > { %713 = vset.pattern.permute.xlu2 %v942_v4  ;;  %391 = vmatpush.msra.mxu0 %v371_v10  ;;  %vm397_vm10 = vcmask 261120  }
  0x3a   : > { %343 = vperm.xlu2 %713, %v308_v1   ;;  %v311_v13 = vand.u32 127, %v310_v12 }
  0x3c   : > { %v313_v17 = vadd.s32 %v312_v16, %v311_v13  ;;  %v370_v39 = vld [vmem:[#allocation2] sm:$0xff] }
  0x40   : > { %710 = vset.pattern.permute.xlu0 %v943_v5  ;;  %712 = vset.pattern.permute.xlu1 %v944_v6 }
  0x41   : > { %322 = vperm.xlu0 %710, %v308_v1   ;;  %336 = vperm.xlu1 %712, %v308_v1  }
  0x42   : > { %714 = vset.pattern.permute.xlu2 %v945_v7 }
  0x43   : > { %350 = vperm.xlu2 %714, %v308_v1  }
  0x49   : > { %715 = vset.pattern.permute.xlu1 %v946_v8  ;;  %717 = vset.pattern.permute.xlu0 %v947_v9 }
  0x4a   : > { %357 = vperm.xlu1 %715, %v308_v1  }
  0x4b   : > { %716 = vset.pattern.permute.xlu2 %v947_v9 }
  0x4c   : > { %364 = vperm.xlu2 %716, %v308_v1  }
  0x94   : > { %v344_v11 = vpop.permute.xlu2 %343 }
  0x95   : > { %vm345_vm5 = vcmp.eq.s32.totalorder %v344_v11, %v313_v17 }
  0x96   : > { %v592_v30 = vsel %vm345_vm5, 1.0, %v948_v21 }
  0x9d   : > { %v351_v18 = vpop.permute.xlu2 %350 }
  0x9e   : > { %vm352_vm6 = vcmp.eq.s32.totalorder %v351_v18, %v313_v17 }
  0x9f   : > { %v593_v33 = vsel %vm352_vm6, 1.0, %v948_v21 }
  0xa6   : > { %v365_v28 = vpop.permute.xlu2 %364 }
  0xa7   : > { %vm366_vm7 = vcmp.eq.s32.totalorder %v365_v28, %v313_v17 }
  0xa8   : > { %v595_v36 = vsel %vm366_vm7, 1.0, %v948_v21 }
  0xaa   : > { %v316_v14 = vpop.permute.xlu0 %315  ;;  %v330_v15 = vpop.permute.xlu1 %329 }
  0xab   : > { %vm317_vm1 = vcmp.eq.s32.totalorder %v316_v14, %v313_v17  ;;  %vm331_vm2 = vcmp.eq.s32.totalorder %v330_v15, %v313_v17 }
  0xac   : > { %v588_v22 = vsel %vm317_vm1, 1.0, %v948_v21  ;;  %v590_v25 = vsel %vm331_vm2, 1.0, %v948_v21 }
  0xb3   : > { %v323_v19 = vpop.permute.xlu0 %322  ;;  %v337_v20 = vpop.permute.xlu1 %336 }
  0xb4   : > { %vm324_vm3 = vcmp.eq.s32.totalorder %v323_v19, %v313_v17  ;;  %vm338_vm4 = vcmp.eq.s32.totalorder %v337_v20, %v313_v17 }
  0xb5   : > { %v589_v23 = vsel %vm324_vm3, 1.0, %v948_v21  ;;  %v591_v27 = vsel %vm338_vm4, 1.0, %v948_v21 }
  0xb6   : > { %v327_v24 = vadd.f32 %v589_v23, %v588_v22 }
  0xb8   : > { %v334_v26 = vadd.f32 %v590_v25, %v327_v24 }
  0xba   : > { %v341_v29 = vadd.f32 %v591_v27, %v334_v26 }
  0xbc   : > { %v348_v31 = vadd.f32 %v592_v30, %v341_v29  ;;  %v358_v32 = vpop.permute.xlu1 %357 }
  0xbd   : > { %vm359_vm8 = vcmp.eq.s32.totalorder %v358_v32, %v313_v17 }
  0xbe   : > { %v355_v34 = vadd.f32 %v593_v33, %v348_v31  ;;  %v594_v35 = vsel %vm359_vm8, 1.0, %v948_v21 }
  0xc0   : > { %v362_v37 = vadd.f32 %v594_v35, %v355_v34 }
  0xc2   : > { %v369_v38 = vadd.f32 %v595_v36, %v362_v37 }
  0xc4   : > { %596 = vmatmul.msk.f32.vlgmr.msra.gmra.mxu0 %vm372_vm9, %v369_v38 }
 0x140   : > { %402 = sbr.rel (%p597_p1) target bundleno = 592 (0x250), region = 64 }
 0x141   : > { %v393_v40 = vpop.f32.mrf.mxu0 }
 0x142   : > { %v396_v41 = vadd.f32 %v393_v40, %v370_v39 }
 0x144   : > { %398 = vst.msk [vmem:[#allocation2] sm:$0xff] %vm397_vm10, %v396_v41 }
 0x145   : > { %v408_v42 = vld [vmem:[#allocation8 + $0x18] sm:$0xff]  ;;  %v407_v43 = vld [vmem:[#allocation8 + $0x10] sm:$0xff]  ;;  %v406_v45 = vld [vmem:[#allocation8 + $0x8] sm:$0xff]  ;;  %vm443_vm11 = vcmask 523264  }
 0x146   : > { %425 = vmatpush.msra.mxu0 %v408_v42  ;;  %v441_v44 = vld [vmem:[#allocation9 + $0x38] sm:$0xff]  ;;  %v440_v46 = vld [vmem:[#allocation9 + $0x30] sm:$0xff]  ;;  %v439_v47 = vld [vmem:[#allocation9 + $0x28] sm:$0xff] }
 0x147   : > { %455 = vmatpush.msra.mxu1 %v441_v44  ;;  %v405_v48 = vld [vmem:[#allocation8] sm:$0xff]  ;;  %v437_v51 = vld [vmem:[#allocation9 + $0x18] sm:$0xff]  ;;  %v436_v52 = vld [vmem:[#allocation9 + $0x10] sm:$0xff] }
 0x148   : > { %426 = vmatpush.msra.mxu0 %v407_v43  ;;  %v438_v50 = vld [vmem:[#allocation9 + $0x20] sm:$0xff]  ;;  %v435_v53 = vld [vmem:[#allocation9 + $0x8] sm:$0xff] }
 0x149   : > { %456 = vmatpush.msra.mxu1 %v440_v46  ;;  %v434_v54 = vld [vmem:[#allocation9] sm:$0xff] }
 0x14a   : > { %427 = vmatpush.msra.mxu0 %v406_v45  ;;  %v404_v55 = vld [vmem:[%s1137_s4] sm:$0x3] }
 0x14b   : > { %v403_v49 = vld [vmem:[#allocation2] sm:$0xff]  ;;  %457 = vmatpush.msra.mxu1 %v439_v47  ;;  %v409_v56 = vperm.slane %v404_v55, 0  ;;  %v442_v60 = vperm.slane %v404_v55, 1 }
 0x14c   : > { %428 = vmatpush.msra.mxu0 %v405_v48 }
 0x14d   : > { %598 = vmatmul.msk.f32.vlgmr.msra.gmra.mxu0 %vm397_vm10, %v403_v49  ;;  %458 = vmatpush.msra.mxu1 %v438_v50 }
 0x14f   : > { %459 = vmatpush.msra.mxu1 %v437_v51 }
 0x151   : > { %460 = vmatpush.msra.mxu1 %v436_v52 }
 0x153   : > { %461 = vmatpush.msra.mxu1 %v435_v53 }
 0x155   : > { %462 = vmatpush.msra.mxu1 %v434_v54 }
 0x1ca   : > { %v430_v57 = vpop.f32.mrf.mxu0 }
 0x1cb   : > { %v431_v58 = vadd.f32 %v430_v57, %v409_v56 }
 0x1cd   : > { %v433_v59 = vmax.f32 %v431_v58, 0.0 }
 0x1cf   : > { %599 = vmatmul.msk.f32.vlgmr.msra.gmra.mxu1 %vm443_vm11, %v433_v59 }
 0x24c   : > { %v464_v61 = vpop.f32.mrf.mxu1 }
 0x24d   : > { %v465_v62 = vadd.f32 %v464_v61, %v442_v60 }
 0x24f   : > { %467 = vst [vmem:[#allocation11] sm:$0xff] %v465_v62 }
 0x250 PF: > { %p643_p3 = scmp.eq.s32.totalorder %s1014_s27, 1  ;;  %s478_s11 = sshll.u32 %s1138_s5, 4  ;;  %s479_s11 = int_to_ptr.hbm [resolvable:$true] %s478_s11 }
 0x251   : > { %s949_s12 = smov [#allocation11]  }
 0x252   : > { %s476_s13 = sshll.u32 %s949_s12, 4  ;;  %s477_s13 = int_to_ptr.vmem [resolvable:$true] %s476_s13 }
 0x253   : > { %619 = dma.vmem_to_hbm [thread:$0]  (%p643_p3), %s477_s13, 128, %s479_s11, [#allocation5]  }
 0x254   : > { %907 = dma.done.wait (%p643_p3), [#allocation5], 128  }
 0x255   : > { %909 = vsyncadd (%p643_p3), [#allocation5], 4294967168 }
 0x256 PF: > { %s21_s23 = sadd.s32 1, %s932_s23   ;;  %s1143_s18 = smov %s916_s19 }
 0x257   : > { %p18_p4 = scmp.ge.s32.totalorder %s21_s23, 4   ;;  %s1144_s19 = smov %s920_s20 }
 0x258   : > { %s1145_s20 = smov %s1068_s9  ;;  %s1146_s21 = smov %s928_s22 }
 0x259   : > { %s1147_s22 = smov %s1149_s25  ;;  %20 = sbr.rel (!%p18_p4) target bundleno = 7 (0x7), region = 100 }
 0x25e   :  { %492 = vsyncpa [#allocation4], 1 }
 0x25f   :  { %494 = vsyncpa [#allocation4 + $0x1], 1 }
 0x260   :  { %495 = vsyncpa [#allocation7], 1 }
 0x261   :  { %497 = vsyncpa [#allocation7 + $0x1], 1 }
 0x262   :  { %498 = vsyncpa [#allocation10], 1 }
 0x263   :  { %499 = vsyncpa [#allocation5], 1 }
 0x264   :  { %501 = vsyncpa [#allocation5 + $0x1], 1 }

</bundles_post_ra>
